<compile_context>
chip_gen: v6e
topology: v6e:2x2x1
jax: 0.10.0
libtpu: 0.0.40
codegen_flags: <defaults>
</compile_context>

<pallas_src>
import jax
import jax.numpy as jnp
from jax.experimental import pallas as pl
from jax.experimental.pallas import tpu as pltpu


def _round_up(x, m):
    return (x + m - 1) // m * m


def _cdiv(a, b):
    return (a + b - 1) // b


# -----------------------------------------------------------------------------
# Kernel 1: embedding head (Linear -> ReLU -> [Dropout=id] -> Linear),
#           token masking and L2 normalization (F.normalize, p=2, eps=1e-12).
#           Matmuls run in bf16 on the MXU with f32 accumulation; mask/normalize
#           run in f32; rsqrt goes to the EUP slot.
# -----------------------------------------------------------------------------
def embed_kernel(x_ref, m_ref, w1_ref, b1_ref, w2_ref, b2_ref, o_ref):
    x = x_ref[...]                                                   # (TM, H) bf16
    h = jnp.dot(x, w1_ref[...], preferred_element_type=jnp.float32) + b1_ref[...]
    h = jnp.maximum(h, 0.0)                                          # ReLU (f32)
    e = jnp.dot(h.astype(jnp.bfloat16), w2_ref[...],
                preferred_element_type=jnp.float32) + b2_ref[...]    # (TM, E) f32
    e = e * m_ref[...]                                               # (TM, 1) mask broadcast
    ssq = jnp.sum(e * e, axis=-1, keepdims=True)                     # (TM, 1)
    # F.normalize: e / max(||e||, 1e-12)  ==  e * rsqrt(max(||e||^2, 1e-24))
    inv = jax.lax.rsqrt(jnp.maximum(ssq, 1e-24))
    o_ref[...] = (e * inv).astype(o_ref.dtype)


def embedding_head_norm(hidden2d, mask2d, W1, b1, W2, b2, tm_max=512):
    """hidden2d: (NR, H) [bf16], mask2d: (NR, 1) -> (NR, E) bf16 (masked, L2-normalized)."""
    NR, H = hidden2d.shape
    Hh = W1.shape[1]
    E = W2.shape[1]

    # Large MXU-shaped row tile (each grid step costs ~0.35 us fixed overhead), but keep
    # at least 2 grid steps so both v7x TensorCores get work. tm is a multiple of 16 for
    # bf16 sublane packing. Padded rows have zero hidden state + zero mask and normalize
    # to exactly 0 (sliced off below).
    tm = min(tm_max, max(16, _round_up(_cdiv(NR, 2), 16)))
    NR_pad = _round_up(NR, tm)
    if NR_pad != NR:
        hidden2d = jnp.pad(hidden2d, ((0, NR_pad - NR), (0, 0)))
        mask2d = jnp.pad(mask2d, ((0, NR_pad - NR), (0, 0)))

    xb = hidden2d.astype(jnp.bfloat16)
    w1b = W1.astype(jnp.bfloat16)
    w2b = W2.astype(jnp.bfloat16)

    # Right-size the scoped VMEM limit: double-buffered streamed tiles + (possibly
    # double-buffered) resident weights + f32 intermediates, with 2x headroom.
    stream = 2 * (tm * H * 2 + tm * 1 * 4 + tm * E * 2)
    weights = 2 * (H * Hh * 2 + Hh * 4 + Hh * E * 2 + E * 4)
    interm = tm * Hh * 4 + tm * E * 4 + tm * H * 4
    vmem_limit = int(min(64 * 1024 * 1024,
                         max(16 * 1024 * 1024,
                             2 * (stream + weights + interm) + (2 << 20))))

    out = pl.pallas_call(
        embed_kernel,
        out_shape=jax.ShapeDtypeStruct((NR_pad, E), jnp.bfloat16),
        grid=(NR_pad // tm,),
        in_specs=[
            pl.BlockSpec((tm, H), lambda i: (i, 0)),
            pl.BlockSpec((tm, 1), lambda i: (i, 0)),
            # Weights/biases stay VMEM-resident (constant index_map).
            # TODO(synk): mark these pipeline_mode=pl.Buffered(1) once confirmed safe, to
            #             reclaim the redundant second buffer on big (768x768) weights.
            pl.BlockSpec((H, Hh), lambda i: (0, 0)),
            pl.BlockSpec((1, Hh), lambda i: (0, 0)),
            pl.BlockSpec((Hh, E), lambda i: (0, 0)),
            pl.BlockSpec((1, E), lambda i: (0, 0)),
        ],
        out_specs=pl.BlockSpec((tm, E), lambda i: (i, 0)),
        compiler_params=pltpu.CompilerParams(
            dimension_semantics=("parallel",),
            vmem_limit_bytes=vmem_limit,
        ),
    )(xb, mask2d.astype(jnp.float32), w1b, b1.astype(jnp.float32),
      w2b, b2.astype(jnp.float32))
    return out[:NR]


# -----------------------------------------------------------------------------
# Kernel 2: ColBERT score_pair (raw MaxSim sums).
#   TB batch pairs per grid step; both operands arrive in natural (B, L, E) layout and
#   the contraction runs over the shared last dim E (einsum 'bqe,bde->bqd'), so any
#   operand transpose happens in-kernel on the idle XLU slot — no host-side HBM pass.
#   Doc-mask multiply is unnecessary: masked doc tokens already have exactly-zero
#   embeddings, so their score columns are 0 (0-floor MaxSim, same as the reference's
#   mask multiply). The division by #real-query-tokens is hoisted out of the kernel.
# -----------------------------------------------------------------------------
def score_kernel(q_ref, d_ref, out_ref):
    q = q_ref[...]                                                   # (TB, Lq, E) bf16
    d = d_ref[...]                                                   # (TB, Ld, E) bf16
    s = jnp.einsum('bqe,bde->bqd', q, d,
                   preferred_element_type=jnp.float32)               # (TB, Lq, Ld)
    mx = jnp.max(s, axis=2)                                          # (TB, Lq)  MaxSim
    out_ref[...] = jnp.sum(mx, axis=1)[None, :]                      # (1, TB) lane-dense


def colbert_score_sums(q_emb, d_emb, tb_max=32, vmem_budget=40 * 1024 * 1024):
    """q_emb: (B,Lq,E), d_emb: (B,Ld,E) -> (B,) raw sums of per-query-token maxima."""
    B, Lq, E = q_emb.shape
    Ld = d_emb.shape[1]

    def footprint(t):
        stream = 2 * (t * Lq * E * 2 + t * Ld * E * 2) + 2 * t * 4
        interm = t * Lq * Ld * 4 + t * Lq * 4 + t * Lq * E * 4 + t * Ld * E * 4
        return stream + interm

    # Big TB (the per-step work is comparable to the ~0.35 us fixed step overhead),
    # capped so double-buffered blocks + f32 intermediates fit the VMEM budget
    # (keeps long-doc cases inside v7x's 64 MiB).
    tb = min(tb_max, _round_up(B, 8))
    while tb > 8 and 2 * footprint(tb) > vmem_budget:
        tb //= 2
    # TODO(synk): for very long docs (Ld >= a few K) add a second 'arbitrary' grid axis
    #             over Ld tiles with a running per-(b,q) max accumulator in VMEM scratch.

    B_pad = _round_up(B, tb)
    if B_pad != B:
        q_emb = jnp.pad(q_emb, ((0, B_pad - B), (0, 0), (0, 0)))
        d_emb = jnp.pad(d_emb, ((0, B_pad - B), (0, 0), (0, 0)))
    nbt = B_pad // tb

    vmem_limit = int(min(64 * 1024 * 1024,
                         max(16 * 1024 * 1024, 2 * footprint(tb) + (2 << 20))))

    out = pl.pallas_call(
        score_kernel,
        out_shape=jax.ShapeDtypeStruct((nbt, tb), jnp.float32),
        grid=(nbt,),
        in_specs=[
            pl.BlockSpec((tb, Lq, E), lambda b: (b, 0, 0)),
            pl.BlockSpec((tb, Ld, E), lambda b: (b, 0, 0)),
        ],
        out_specs=pl.BlockSpec((1, tb), lambda b: (b, 0)),
        compiler_params=pltpu.CompilerParams(
            dimension_semantics=("parallel",),
            vmem_limit_bytes=vmem_limit,
        ),
    )(q_emb, d_emb)
    return out.reshape(B_pad)[:B]


# -----------------------------------------------------------------------------
# Full ColBERT.forward (minus the BERT backbone): query(), doc(), score_pair()
# -----------------------------------------------------------------------------
def colbert_forward(params, q_hidden, q_attn_mask, d_hidden, d_input_ids, doc_mask_buffer):
    W1, b1, W2, b2 = params
    B, Lq, H = q_hidden.shape
    Ld = d_hidden.shape[1]
    E = W2.shape[1]

    # ---- masks (glue, elementwise int compare; query_pad_token is None branch)
    q_mask = q_attn_mask.astype(jnp.float32)                                   # (B, Lq)
    punct_mask = ~(d_input_ids[..., None] == doc_mask_buffer[None, None, :]).any(axis=-1)
    d_mask = punct_mask.astype(jnp.float32)                                    # (B, Ld)

    # ---- fused query()+doc() embedding head: one pallas_call over all stacked rows.
    #      bf16 cast happens BEFORE the concat so the stack moves half the bytes.
    hidden = jnp.concatenate([q_hidden.astype(jnp.bfloat16).reshape(B * Lq, H),
                              d_hidden.astype(jnp.bfloat16).reshape(B * Ld, H)], axis=0)
    mask = jnp.concatenate([q_mask.reshape(B * Lq, 1),
                            d_mask.reshape(B * Ld, 1)], axis=0)
    emb = embedding_head_norm(hidden, mask, W1, b1, W2, b2)                    # bf16
    q_emb = emb[: B * Lq].reshape(B, Lq, E)
    d_emb = emb[B * Lq:].reshape(B, Ld, E)

    # ---- score_pair(): raw MaxSim sums in-kernel (no host-side doc transpose),
    #      divide by #real query tokens outside.
    totals = colbert_score_sums(q_emb, d_emb)                                  # (B,)
    denom = jnp.sum(q_mask, axis=-1)                                           # (B,)
    return totals / denom


# -----------------------------------------------------------------------------
# Pure-JAX reference (mirrors the PyTorch math, with the same bf16 MXU casts).
# -----------------------------------------------------------------------------
def reference_forward(params, q_hidden, q_attn_mask, d_hidden, d_input_ids, doc_mask_buffer):
    W1, b1, W2, b2 = params
    w1b = W1.astype(jnp.bfloat16)
    w2b = W2.astype(jnp.bfloat16)

    def head(x, m):
        h = jnp.dot(x.astype(jnp.bfloat16), w1b, preferred_element_type=jnp.float32) + b1
        h = jnp.maximum(h, 0.0)
        e = jnp.dot(h.astype(jnp.bfloat16), w2b, preferred_element_type=jnp.float32) + b2
        e = e * m[..., None]
        ssq = jnp.sum(e * e, axis=-1, keepdims=True)
        return (e * jax.lax.rsqrt(jnp.maximum(ssq, 1e-24))).astype(jnp.bfloat16)

    q_mask = q_attn_mask.astype(jnp.float32)
    q_emb = head(q_hidden, q_mask)
    punct_mask = ~(d_input_ids[..., None] == doc_mask_buffer[None, None, :]).any(axis=-1)
    d_mask = punct_mask.astype(jnp.float32)
    d_emb = head(d_hidden, d_mask)
    s = jnp.einsum('bqe,bde->bqd', q_emb, d_emb,
                   preferred_element_type=jnp.float32) * d_mask[:, None, :]
    return s.max(axis=-1).sum(axis=-1) / q_mask.sum(axis=-1)


if __name__ == "__main__":
    key = jax.random.PRNGKey(0)
    B, Lq, Ld = 2, 8, 16
    H, Hh, E = 32, 32, 32   # hidden_size, embedding_hidden_size, embedding_dim

    k1, k2, k3, k4, k5, k6, k7 = jax.random.split(key, 7)

    # Deterministic "embedding_head" parameters
    W1 = jax.random.normal(k1, (H, Hh), jnp.float32) * 0.1
    b1 = jax.random.normal(k2, (1, Hh), jnp.float32) * 0.01
    W2 = jax.random.normal(k3, (Hh, E), jnp.float32) * 0.1
    b2 = jax.random.normal(k4, (1, E), jnp.float32) * 0.01
    params = (W1, b1, W2, b2)

    # Synthetic BERT last_hidden_state outputs
    q_hidden = jax.random.normal(k5, (B, Lq, H), jnp.float32)
    d_hidden = jax.random.normal(k6, (B, Ld, H), jnp.float32)

    # Query attention mask: second query has 2 padding positions
    q_attn_mask = jnp.array([[1] * Lq, [1] * (Lq - 2) + [0, 0]], dtype=jnp.int32)

    # Doc input ids and mask buffer (pad id + a few "punctuation" ids)
    d_input_ids = jax.random.randint(k7, (B, Ld), 0, 20, dtype=jnp.int32)
    doc_mask_buffer = jnp.array([0, 5, 7, 11], dtype=jnp.int32)

    scores = colbert_forward(params, q_hidden, q_attn_mask, d_hidden,
                             d_input_ids, doc_mask_buffer)
    scores = jax.block_until_ready(scores)

    ref = reference_forward(params, q_hidden, q_attn_mask, d_hidden,
                            d_input_ids, doc_mask_buffer)
    assert scores.shape == (B,)
    assert jnp.allclose(scores, ref, rtol=2e-2, atol=2e-2), (scores, ref)

    print("KERNEL_OK")
</pallas_src>

<mosaic_0001>
module attributes {stable_mosaic.version = 11 : i64} {
  func.func @embed_kernel(%arg0: i32, %arg1: memref<32x32xbf16, #tpu.memory_space<vmem>>, %arg2: memref<32x1xf32, #tpu.memory_space<vmem>>, %arg3: memref<32x32xbf16, #tpu.memory_space<vmem>>, %arg4: memref<1x32xf32, #tpu.memory_space<vmem>>, %arg5: memref<32x32xbf16, #tpu.memory_space<vmem>>, %arg6: memref<1x32xf32, #tpu.memory_space<vmem>>, %arg7: memref<32x32xbf16, #tpu.memory_space<vmem>>) attributes {dimension_semantics = [#tpu.dimension_semantics<parallel>], iteration_bounds = array<i64: 2>, scalar_prefetch = 0 : i64, scratch_operands = 0 : i64, tpu.core_type = #tpu.core_type<tc>, window_params = [{transform_indices = @transform_0, window_bounds = array<i64: 32, 32>}, {transform_indices = @transform_1, window_bounds = array<i64: 32, 1>}, {pipeline_mode = #tpu.pipeline_mode<synchronous>, transform_indices = @transform_2, window_bounds = array<i64: 32, 32>}, {pipeline_mode = #tpu.pipeline_mode<synchronous>, transform_indices = @transform_3, window_bounds = array<i64: 1, 32>}, {pipeline_mode = #tpu.pipeline_mode<synchronous>, transform_indices = @transform_4, window_bounds = array<i64: 32, 32>}, {pipeline_mode = #tpu.pipeline_mode<synchronous>, transform_indices = @transform_5, window_bounds = array<i64: 1, 32>}, {transform_indices = @transform_6, window_bounds = array<i64: 32, 32>}]} {
    %c0 = arith.constant 0 : index
    %c0_0 = arith.constant 0 : index
    %0 = vector.load %arg1[%c0, %c0_0] : memref<32x32xbf16, #tpu.memory_space<vmem>>, vector<32x32xbf16>
    %c0_1 = arith.constant 0 : index
    %c0_2 = arith.constant 0 : index
    %1 = vector.load %arg3[%c0_1, %c0_2] : memref<32x32xbf16, #tpu.memory_space<vmem>>, vector<32x32xbf16>
    %cst = arith.constant dense<0.000000e+00> : vector<32x32xf32>
    %2 = tpu.matmul %0, %1, %cst {dimension_numbers = #tpu.dot_dimension_numbers<[1], [0], [0], [1], [0, 0, 1, 1], [], []>} : vector<32x32xbf16>, vector<32x32xbf16>, vector<32x32xf32> -> vector<32x32xf32>
    %c0_3 = arith.constant 0 : index
    %c0_4 = arith.constant 0 : index
    %3 = vector.load %arg4[%c0_3, %c0_4] : memref<1x32xf32, #tpu.memory_space<vmem>>, vector<1x32xf32>
    %4 = vector.broadcast %3 : vector<1x32xf32> to vector<32x32xf32>
    %5 = arith.addf %2, %4 : vector<32x32xf32>
    %cst_5 = arith.constant 0.000000e+00 : f32
    %6 = vector.broadcast %cst_5 : f32 to vector<32x32xf32>
    %7 = arith.maximumf %5, %6 : vector<32x32xf32>
    %8 = arith.truncf %7 : vector<32x32xf32> to vector<32x32xbf16>
    %c0_6 = arith.constant 0 : index
    %c0_7 = arith.constant 0 : index
    %9 = vector.load %arg5[%c0_6, %c0_7] : memref<32x32xbf16, #tpu.memory_space<vmem>>, vector<32x32xbf16>
    %cst_8 = arith.constant dense<0.000000e+00> : vector<32x32xf32>
    %10 = tpu.matmul %8, %9, %cst_8 {dimension_numbers = #tpu.dot_dimension_numbers<[1], [0], [0], [1], [0, 0, 1, 1], [], []>} : vector<32x32xbf16>, vector<32x32xbf16>, vector<32x32xf32> -> vector<32x32xf32>
    %c0_9 = arith.constant 0 : index
    %c0_10 = arith.constant 0 : index
    %11 = vector.load %arg6[%c0_9, %c0_10] : memref<1x32xf32, #tpu.memory_space<vmem>>, vector<1x32xf32>
    %12 = vector.broadcast %11 : vector<1x32xf32> to vector<32x32xf32>
    %13 = arith.addf %10, %12 : vector<32x32xf32>
    %c0_11 = arith.constant 0 : index
    %c0_12 = arith.constant 0 : index
    %14 = vector.load %arg2[%c0_11, %c0_12] : memref<32x1xf32, #tpu.memory_space<vmem>>, vector<32x1xf32>
    %15 = vector.broadcast %14 : vector<32x1xf32> to vector<32x32xf32>
    %16 = arith.mulf %13, %15 : vector<32x32xf32>
    %17 = arith.mulf %16, %16 : vector<32x32xf32>
    %cst_13 = arith.constant dense<0.000000e+00> : vector<32xf32>
    %18 = vector.multi_reduction <add>, %17, %cst_13 [1] : vector<32x32xf32> to vector<32xf32>
    %19 = vector.shape_cast %18 : vector<32xf32> to vector<32x1xf32>
    %cst_14 = arith.constant 1.000000e-24 : f32
    %20 = vector.broadcast %cst_14 : f32 to vector<32x1xf32>
    %21 = arith.maximumf %19, %20 : vector<32x1xf32>
    %22 = math.rsqrt %21 : vector<32x1xf32>
    %23 = vector.broadcast %22 : vector<32x1xf32> to vector<32x32xf32>
    %24 = arith.mulf %16, %23 : vector<32x32xf32>
    %25 = arith.truncf %24 : vector<32x32xf32> to vector<32x32xbf16>
    %c0_15 = arith.constant 0 : index
    %c0_16 = arith.constant 0 : index
    %26 = vector.load %arg7[%c0_15, %c0_16] : memref<32x32xbf16, #tpu.memory_space<vmem>>, vector<32x32xbf16>
    tpu.vector_store %arg7[%c0_15, %c0_16], %25 {strides = array<i32>} : memref<32x32xbf16, #tpu.memory_space<vmem>>, vector<32x32xbf16>,
    return
  }
  func.func @transform_0(%arg0: i32) -> (i32, i32) {
    %c0_i32 = arith.constant 0 : i32
    %c0_i32_0 = arith.constant 0 : i32
    return %arg0, %c0_i32 : i32, i32
  }
  func.func @transform_1(%arg0: i32) -> (i32, i32) {
    %c0_i32 = arith.constant 0 : i32
    %c0_i32_0 = arith.constant 0 : i32
    return %arg0, %c0_i32 : i32, i32
  }
  func.func @transform_2(%arg0: i32) -> (i32, i32) {
    %c0_i32 = arith.constant 0 : i32
    %c0_i32_0 = arith.constant 0 : i32
    %c0_i32_1 = arith.constant 0 : i32
    return %c0_i32, %c0_i32_0 : i32, i32
  }
  func.func @transform_3(%arg0: i32) -> (i32, i32) {
    %c0_i32 = arith.constant 0 : i32
    %c0_i32_0 = arith.constant 0 : i32
    %c0_i32_1 = arith.constant 0 : i32
    return %c0_i32, %c0_i32_0 : i32, i32
  }
  func.func @transform_4(%arg0: i32) -> (i32, i32) {
    %c0_i32 = arith.constant 0 : i32
    %c0_i32_0 = arith.constant 0 : i32
    %c0_i32_1 = arith.constant 0 : i32
    return %c0_i32, %c0_i32_0 : i32, i32
  }
  func.func @transform_5(%arg0: i32) -> (i32, i32) {
    %c0_i32 = arith.constant 0 : i32
    %c0_i32_0 = arith.constant 0 : i32
    %c0_i32_1 = arith.constant 0 : i32
    return %c0_i32, %c0_i32_0 : i32, i32
  }
  func.func @transform_6(%arg0: i32) -> (i32, i32) {
    %c0_i32 = arith.constant 0 : i32
    %c0_i32_0 = arith.constant 0 : i32
    return %arg0, %c0_i32 : i32, i32
  }
}

</mosaic_0001>

<bundles_post_ra>
// kernel: tpu_custom_call.1
= control target key start
LH: loop header
LB: loop body
LE: loop exit
PB: predicated region body
PF: predicated region fallthrough
CT: control target
= control target key end

     0   :  { %s726_s21 = smov 0   ;;  %s780_s0 = inlined_call_operand.vmem [shape: bf16[64,32], index: 0, kind: input, shape index: {}]   ;;  %s781_s1 = inlined_call_operand.vmem [shape: f32[64,1], index: 1, kind: input, shape index: {}]   ;;  %s782_s2 = inlined_call_operand.vmem [shape: bf16[32,32], index: 2, kind: input, shape index: {}]   ;;  %s783_s3 = inlined_call_operand.vmem [shape: f32[1,32], index: 3, kind: input, shape index: {}]   ;;  %s784_s4 = inlined_call_operand.vmem [shape: bf16[32,32], index: 4, kind: input, shape index: {}]   ;;  %s785_s5 = inlined_call_operand.vmem [shape: f32[1,32], index: 5, kind: input, shape index: {}]   ;;  %s786_s6 = inlined_call_operand.vmem [shape: bf16[64,32], index: 6, kind: output, shape index: {}]  }
   0x1 LB: > { %s600_s22 = sadd.s32 4294967295, %s688_s21   ;;  %p604_p0 = scmp.ge.s32.totalorder %s688_s21, 1  ;;  %s688_s21 = sphi %s726_s21, %s16_s21  }
   0x2   : > { %p224_p1 = scmp.lt.s32.totalorder %s688_s21, 3 }
   0x4   : > { %p225_p2 = pnand %p604_p0, %p224_p1 }
   0x5   : > { %s605_s25 = sshll.u32 (!%p225_p2), %s600_s22, 2 }
   0x6   : > { %228 = sbr.rel (%p225_p2) target bundleno = 595 (0x253), region = 44  ;;  %p260_p3 = scmp.lt.s32.totalorder (!%p225_p2), %s605_s25, 7 }
   0xb   : > { %v668_v0 = vld [vmem:[%s782_s2 + $0x8] sm:$0xff]   ;;  %v669_v1 = vld [vmem:[%s782_s2] sm:$0xff]   ;;  %s788_s25 = smov (!%p260_p3, %s605_s25), 7  ;;  %vm315_vm0 = vcmask 261120   ;;  %v690_v6 = vmov 0   ;;  %vm527_vm1 = vcmask 257024  }
   0xc   : > { %641 = vmatprep.subr.bf16.mxu0 %v668_v0  ;;  %s606_s28 = sshll.u32 %s788_s25, 2  ;;  %v672_v4 = vld [vmem:[%s784_s4 + $0x8] sm:$0xff]   ;;  %v673_v5 = vld [vmem:[%s784_s4] sm:$0xff]   ;;  %s608_s12 = sshll.u32 %s788_s25, 3  ;;  %666 = vset.pattern.permute.xlu0 %v690_v6 }
   0xd   : > { %642 = vmatpush3.bf16.msra.mxu0 %v668_v0  ;;  %s263_s7 = scalar_lea.vmem %s780_s0, %s606_s28  ;;  %649 = vmatprep.subr.bf16.mxu1 %v672_v4  ;;  %s269_s15 = scalar_lea.vmem %s781_s1, %s608_s12  ;;  %v611_v13 = vld [vmem:[%s783_s3] ss:$0 sm:$0xff] }
   0xe   : > { %643 = vmatprep.subr.bf16.mxu0 %v669_v1  ;;  %v670_v2 = vld [vmem:[%s263_s7] sm:$0xff]   ;;  %v671_v3 = vld [vmem:[%s263_s7 + $0x8] sm:$0xff]   ;;  %650 = vmatpush3.bf16.msra.mxu1 %v672_v4  ;;  %v457_v8 = vld [vmem:[%s269_s15 + $0x10] sm:$0xff]  ;;  %s275_s23 = scalar_lea.vmem %s786_s6, %s606_s28 }
   0xf   : > { %645 = vmatprep.mubr.msk.bf16.mxu0 %vm315_vm0, %v670_v2  ;;  %651 = vmatprep.subr.bf16.mxu1 %v673_v5  ;;  %v455_v7 = vld [vmem:[%s269_s15] sm:$0xff]  ;;  %v456_v9 = vld [vmem:[%s269_s15 + $0x8] sm:$0xff]  ;;  %v458_v10 = vld [vmem:[%s269_s15 + $0x18] sm:$0xff] }
  0x10   : > { %667 = vset.pattern.permute.xlu1 %v690_v6  ;;  %461 = vperm.xlu0 %666, %v455_v7   ;;  %v618_v26 = vld [vmem:[%s785_s5] ss:$0 sm:$0xff] }
  0x11   : > { %644 = vmatpush3.bf16.msra.mxu0 %v669_v1  ;;  %471 = vperm.xlu1 %667, %v457_v8  }
  0x12   : > { %652 = vmatpush3.bf16.msra.mxu1 %v673_v5 }
  0x14   : > { %646 = vmatmul.mubr.msk.bf16.vlgmr.msra.gmra.mxu0 %vm315_vm0, %v671_v3  ;;  %466 = vperm.xlu0 %666, %v456_v9  }
  0x15   : > { %476 = vperm.xlu1 %667, %v458_v10  }
  0x8b   : > { %v462_v30 = vpop.permute.xlu0 %461 }
  0x8c   : > { %v472_v28 = vpop.permute.xlu1 %471 }
  0x8f   : > { %v467_v41 = vpop.permute.xlu0 %466 }
  0x90   : > { %v477_v37 = vpop.permute.xlu1 %476 }
  0xd4   : > { %v647_v11 = vpop.f32.mrf.mxu0 }
  0xd5   : > { %v365_v17 = vadd.f32 %v647_v11, %v611_v13 }
  0xd6   : > { %v356_v12 = vpop.f32.mrf.mxu0 }
  0xd7   : > { %v357_v15 = vadd.f32 %v611_v13, %v356_v12  ;;  %v373_v23 = vmax.f32 %v365_v17, 0.0 }
  0xd8   : > { %v648_v14 = vpop.f32.mrf.mxu0 }
  0xd9   : > { %v368_v16 = vadd.f32 %v648_v14, %v611_v13  ;;  %v371_v21 = vmax.f32 %v357_v15, 0.0 }
  0xda   : > { %v359_v18 = vpop.f32.mrf.mxu0 }
  0xdb   : > { %v360_v19 = vadd.f32 %v611_v13, %v359_v18  ;;  %v374_v20 = vmax.f32 %v368_v16, 0.0 }
  0xdd   : > { %v372_v22 = vmax.f32 %v360_v19, 0.0  ;;  %v376_v25 = vpack.c.bf16 %v374_v20, %v373_v23 }
  0xdf   : > { %v375_v24 = vpack.c.bf16 %v372_v22, %v371_v21 }
  0xe1   : > { %653 = vmatprep.mubr.msk.bf16.mxu1 %vm315_vm0, %v375_v24 }
  0xe2   : > { %654 = vmatmul.mubr.msk.bf16.vlgmr.msra.gmra.mxu1 %vm315_vm0, %v376_v25 }
 0x1a2   : > { %v655_v27 = vpop.f32.mrf.mxu1 }
 0x1a3   : > { %v449_v29 = vadd.f32 %v655_v27, %v618_v26 }
 0x1a4   : > { %v440_v31 = vpop.f32.mrf.mxu1 }
 0x1a5   : > { %v441_v32 = vadd.f32 %v618_v26, %v440_v31  ;;  %v481_v34 = vmul.f32 %v472_v28, %v449_v29 }
 0x1a6   : > { %v656_v33 = vpop.f32.mrf.mxu1 }
 0x1a7   : > { %v479_v35 = vmul.f32 %v462_v30, %v441_v32  ;;  %v452_v36 = vadd.f32 %v656_v33, %v618_v26  ;;  %v485_v45 = vmul.f32 %v481_v34, %v481_v34 }
 0x1a8   : > { %v443_v38 = vpop.f32.mrf.mxu1 }
 0x1a9   : > { %v444_v39 = vadd.f32 %v618_v26, %v443_v38  ;;  %v483_v40 = vmul.f32 %v479_v35, %v479_v35  ;;  %v482_v42 = vmul.f32 %v477_v37, %v452_v36  ;;  %v493_v48 = vsel %vm315_vm0, %v485_v45, 0.0 }
 0x1ab   : > { %v480_v43 = vmul.f32 %v467_v41, %v444_v39  ;;  %v487_v44 = vsel %vm315_vm0, %v483_v40, 0.0  ;;  %v486_v49 = vmul.f32 %v482_v42, %v482_v42 }
 0x1ac   : > { %488 = vadd.xlane.f32.xlu0 %v487_v44 }
 0x1ad   : > { %v484_v46 = vmul.f32 %v480_v43, %v480_v43  ;;  %v496_v50 = vsel %vm315_vm0, %v486_v49, 0.0 }
 0x1af   : > { %v490_v47 = vsel %vm315_vm0, %v484_v46, 0.0 }
 0x1b0   : > { %491 = vadd.xlane.f32.xlu1 %v490_v47  ;;  %494 = vadd.xlane.f32.xlu0 %v493_v48 }
 0x1b4   : > { %497 = vadd.xlane.f32.xlu0 %v496_v50 }
 0x235   : > { %v489_v51 = vpop.xlane.xlu0 %488 }
 0x236   : > { %v499_v52 = vmax.f32 %v489_v51, 1e-24 }
 0x238   : > { %674 = vrsqrt.f32 %v499_v52 }
 0x239   : > { %v492_v53 = vpop.xlane.xlu1 %491  ;;  %v495_v54 = vpop.xlane.xlu0 %494 }
 0x23a   : > { %v500_v55 = vmax.f32 %v492_v53, 1e-24  ;;  %v501_v56 = vmax.f32 %v495_v54, 1e-24 }
 0x23c   : > { %676 = vrsqrt.f32 %v500_v55 }
 0x23d   : > { %678 = vrsqrt.f32 %v501_v56  ;;  %v498_v57 = vpop.xlane.xlu0 %497 }
 0x23e   : > { %v502_v58 = vmax.f32 %v498_v57, 1e-24 }
 0x240   : > { %680 = vrsqrt.f32 %v502_v58 }
 0x245   : > { %v675_v59 = vpop.eup %674 }
 0x246   : > { %v507_v60 = vmul.f32 %v675_v59, %v479_v35 }
 0x248   : > { %v629_v61 = vpack.c.bf16 %v507_v60, %v507_v60 }
 0x249   : > { %v677_v62 = vpop.eup %676 }
 0x24a   : > { %v679_v63 = vpop.eup %678  ;;  %528 = vst.msk [vmem:[%s275_s23] sm:$0xf] %vm527_vm1, %v629_v61  ;;  %v508_v0 = vmul.f32 %v677_v62, %v480_v43 }
 0x24b   : > { %v509_v1 = vmul.f32 %v679_v63, %v481_v34 }
 0x24c   : > { %v630_v2 = vpack.c.bf16 %v508_v0, %v508_v0 }
 0x24d   : > { %v681_v3 = vpop.eup %680  ;;  %v631_v4 = vpack.c.bf16 %v509_v1, %v509_v1 }
 0x24e   : > { %529 = vst.msk [vmem:[%s275_s23 + $0x4] sm:$0xf] %vm527_vm1, %v630_v2  ;;  %v510_v5 = vmul.f32 %v681_v3, %v482_v42 }
 0x24f   : > { %530 = vst.msk [vmem:[%s275_s23 + $0x8] sm:$0xf] %vm527_vm1, %v631_v4 }
 0x250   : > { %v632_v6 = vpack.c.bf16 %v510_v5, %v510_v5 }
 0x252   : > { %531 = vst.msk [vmem:[%s275_s23 + $0xc] sm:$0xf] %vm527_vm1, %v632_v6 }
 0x253 PF: > { %s16_s21 = sadd.s32 1, %s688_s21  }
 0x254   : > { %p13_p4 = scmp.ge.s32.totalorder %s16_s21, 4  }
 0x256   :  { %15 = sbr.rel (!%p13_p4) target bundleno = 1 (0x1), region = 77 }

</bundles_post_ra>
